<compile_context>
chip_gen: v7x
topology: tpu7x:2x2x1
jax: 0.10.0
libtpu: 0.0.40
codegen_flags: <defaults>
</compile_context>

<pallas_src>
import functools

import jax
import jax.numpy as jnp
from jax.experimental import pallas as pl
from jax.experimental.pallas import tpu as pltpu  # noqa: F401  (TPU tuning hooks)


def cross_attn_kernel(x_ref, ctx_ref, wc_ref, vec_ref, w_ref, bqkv_ref, o_ref,
                      *, n_heads, head_dim):
    """Single invocation: all batch elements, all heads. Everything fits in VMEM."""
    B, S, D = x_ref.shape
    L = ctx_ref.shape[1]
    H, hd = n_heads, head_dim
    scale = 1.0 / (hd ** 0.5)
    f32 = jnp.float32

    # ---- hoisted parameter loads (packed in the wrapper; one DMA each) ----
    wc = wc_ref[...]                                   # (Dc, D) context projection
    vecs = vec_ref[...]                                # (8, D) packed row vectors
    bc, gamma, beta, bo = vecs[0:1], vecs[1:2], vecs[2:3], vecs[3:4]
    w_all = w_ref[...]                                 # (4, H, hd, D) = Wq,Wk,Wv,Wo
    wq_h, wk_h, wv_h, wo_h = w_all[0], w_all[1], w_all[2], w_all[3]
    b_qkv = bqkv_ref[...]                              # (3, H, 1, hd) = bq,bk,bv
    bq_h, bk_h, bv_h = b_qkv[0], b_qkv[1], b_qkv[2]

    # Static unrolled loop over batch: still ONE kernel invocation / pipeline step.
    for b in range(B):
        xb = x_ref[b]                                  # (S, D)
        cb = ctx_ref[b]                                # (L, Dc)

        # --- context projection (nn.Linear(d_context, d_model)) ---
        ctx_p = jnp.dot(cb, wc, preferred_element_type=f32) + bc          # (L, D)

        # --- pre-norm LayerNorm(d_model), eps=1e-5, biased variance ---
        mean = jnp.mean(xb, axis=-1, keepdims=True)
        var = jnp.mean((xb - mean) ** 2, axis=-1, keepdims=True)
        nx = (xb - mean) * jax.lax.rsqrt(var + 1e-5) * gamma + beta       # (S, D)

        # --- head-major in-projections: batched contraction (batch dim = heads),
        #     no lane slicing, no concat ---
        nx_h = jnp.broadcast_to(nx[None], (H, S, D))
        cx_h = jnp.broadcast_to(ctx_p[None], (H, L, D))
        q = jnp.einsum('hsd,hed->hse', nx_h, wq_h, preferred_element_type=f32) + bq_h
        k = jnp.einsum('hld,hed->hle', cx_h, wk_h, preferred_element_type=f32) + bk_h
        v = jnp.einsum('hld,hed->hle', cx_h, wv_h, preferred_element_type=f32) + bv_h
        q = q * scale          # fold 1/sqrt(hd) into q once (not per (S,L) score)

        # --- scaled-dot-product attention; softmax denom via EUP reciprocal ---
        s = jnp.einsum('hse,hle->hsl', q, k, preferred_element_type=f32)  # (H, S, L)
        s = s - jnp.max(s, axis=-1, keepdims=True)
        p = jnp.exp(s)
        denom = jnp.sum(p, axis=-1, keepdims=True)
        inv = pl.reciprocal(denom, approx=True)
        inv = inv * (2.0 - denom * inv)     # one Newton step: keeps ~f32 accuracy
        o_h = jnp.einsum('hsl,hle->hse', p * inv, v, preferred_element_type=f32)

        # --- out projection: per-head (hd, D) slabs summed over heads + residual ---
        o_proj = jnp.einsum('hse,hed->hsd', o_h, wo_h, preferred_element_type=f32)
        out = o_proj[0]
        for h in range(1, H):
            out = out + o_proj[h]
        o_ref[b] = xb + out + bo             # dropout = identity in eval mode


def _pack_params(params, d_model, n_heads):
    """One-time parameter re-layout (plain JAX, outside the kernel)."""
    (wc, bc, gamma, beta, wq, bq, wk, bk, wv, bv, wo, bo) = params
    H = n_heads
    hd = d_model // H

    def in_proj_heads(w):                     # (D_in, D) -> (H, hd, D_in)
        d_in = w.shape[0]
        return w.reshape(d_in, H, hd).transpose(1, 2, 0)

    w_pack = jnp.stack(
        [in_proj_heads(wq), in_proj_heads(wk), in_proj_heads(wv),
         wo.reshape(H, hd, d_model)], axis=0)                          # (4, H, hd, D)
    b_qkv = jnp.stack(
        [bq.reshape(H, 1, hd), bk.reshape(H, 1, hd), bv.reshape(H, 1, hd)],
        axis=0)                                                        # (3, H, 1, hd)
    vec = jnp.zeros((8, d_model), jnp.float32)
    vec = (vec.at[0].set(bc.reshape(-1)).at[1].set(gamma.reshape(-1))
              .at[2].set(beta.reshape(-1)).at[3].set(bo.reshape(-1)))  # (8, D) slab
    return wc, vec, w_pack, b_qkv


@functools.partial(jax.jit, static_argnums=3)
def cross_attention_block(x, context, params, n_heads):
    B, S, D = x.shape
    wc, vec, w_pack, b_qkv = _pack_params(params, D, n_heads)
    kernel = functools.partial(cross_attn_kernel, n_heads=n_heads,
                               head_dim=D // n_heads)
    # No grid: the whole problem is one kernel invocation; default whole-array
    # BlockSpecs place every operand in VMEM with a single DMA each.
    return pl.pallas_call(
        kernel,
        out_shape=jax.ShapeDtypeStruct((B, S, D), jnp.float32),
    )(x, context, wc, vec, w_pack, b_qkv)


def reference_forward(x, context, params, n_heads):
    """Plain-JAX reference mirroring the PyTorch module (prenorm, eval)."""
    (wc, bc, gamma, beta, wq, bq, wk, bk, wv, bv, wo, bo) = params
    B, S, D = x.shape
    hd = D // n_heads
    scale = 1.0 / (hd ** 0.5)

    ctx = context @ wc + bc                                   # (B, L, D)
    mean = jnp.mean(x, axis=-1, keepdims=True)
    var = jnp.mean((x - mean) ** 2, axis=-1, keepdims=True)
    nx = (x - mean) / jnp.sqrt(var + 1e-5) * gamma + beta

    q = nx @ wq + bq
    k = ctx @ wk + bk
    v = ctx @ wv + bv
    q = q.reshape(B, S, n_heads, hd)
    k = k.reshape(B, -1, n_heads, hd)
    v = v.reshape(B, -1, n_heads, hd)
    s = jnp.einsum('bshd,blhd->bhsl', q, k) * scale
    p = jax.nn.softmax(s, axis=-1)
    o = jnp.einsum('bhsl,blhd->bshd', p, v).reshape(B, S, D)
    return x + (o @ wo + bo)


def make_params(key, d_model, d_context):
    ks = jax.random.split(key, 8)
    def lin(k, din, dout):
        kw, kb = jax.random.split(k)
        w = jax.random.normal(kw, (din, dout), jnp.float32) * 0.1
        b = jax.random.normal(kb, (1, dout), jnp.float32) * 0.02
        return w, b
    wc, bc = lin(ks[0], d_context, d_model)
    wq, bq = lin(ks[1], d_model, d_model)
    wk, bk = lin(ks[2], d_model, d_model)
    wv, bv = lin(ks[3], d_model, d_model)
    wo, bo = lin(ks[4], d_model, d_model)
    gamma = jnp.ones((1, d_model), jnp.float32)
    beta = jnp.zeros((1, d_model), jnp.float32)
    return (wc, bc, gamma, beta, wq, bq, wk, bk, wv, bv, wo, bo)


if __name__ == "__main__":
    B, S, L = 2, 8, 8
    d_model, d_context, n_heads = 32, 16, 4

    key = jax.random.PRNGKey(0)
    kx, kc, kp = jax.random.split(key, 3)
    x = jax.random.normal(kx, (B, S, d_model), jnp.float32)
    context = jax.random.normal(kc, (B, L, d_context), jnp.float32)
    params = make_params(kp, d_model, d_context)

    out = cross_attention_block(x, context, params, n_heads)
    out = jax.block_until_ready(out)

    ref = reference_forward(x, context, params, n_heads)
    assert out.shape == (B, S, d_model)
    err = jnp.max(jnp.abs(out - ref))
    assert jnp.allclose(out, ref, atol=2e-3, rtol=2e-3), \
        f"mismatch vs reference (max abs err {err})"
    print("KERNEL_OK")
</pallas_src>

<mosaic_0001>
module attributes {stable_mosaic.version = 11 : i64} {
  func.func @cross_attn_kernel(%arg0: memref<2x8x32xf32, #tpu.memory_space<vmem>>, %arg1: memref<2x8x16xf32, #tpu.memory_space<vmem>>, %arg2: memref<16x32xf32, #tpu.memory_space<vmem>>, %arg3: memref<8x32xf32, #tpu.memory_space<vmem>>, %arg4: memref<4x4x8x32xf32, #tpu.memory_space<vmem>>, %arg5: memref<3x4x1x8xf32, #tpu.memory_space<vmem>>, %arg6: memref<2x8x32xf32, #tpu.memory_space<vmem>>) attributes {dimension_semantics = [], scalar_prefetch = 0 : i64, scratch_operands = 0 : i64, tpu.core_type = #tpu.core_type<tc>} {
    %c0 = arith.constant 0 : index
    %c0_0 = arith.constant 0 : index
    %0 = vector.load %arg2[%c0, %c0_0] : memref<16x32xf32, #tpu.memory_space<vmem>>, vector<16x32xf32>
    %c0_1 = arith.constant 0 : index
    %c0_2 = arith.constant 0 : index
    %1 = vector.load %arg3[%c0_1, %c0_2] : memref<8x32xf32, #tpu.memory_space<vmem>>, vector<8x32xf32>
    %2 = vector.extract_strided_slice %1 {offsets = [0, 0], sizes = [1, 32], strides = [1, 1]} : vector<8x32xf32> to vector<1x32xf32>
    %3 = vector.extract_strided_slice %1 {offsets = [1, 0], sizes = [1, 32], strides = [1, 1]} : vector<8x32xf32> to vector<1x32xf32>
    %4 = vector.extract_strided_slice %1 {offsets = [2, 0], sizes = [1, 32], strides = [1, 1]} : vector<8x32xf32> to vector<1x32xf32>
    %5 = vector.extract_strided_slice %1 {offsets = [3, 0], sizes = [1, 32], strides = [1, 1]} : vector<8x32xf32> to vector<1x32xf32>
    %c0_3 = arith.constant 0 : index
    %c0_4 = arith.constant 0 : index
    %c0_5 = arith.constant 0 : index
    %c0_6 = arith.constant 0 : index
    %6 = vector.load %arg4[%c0_3, %c0_4, %c0_5, %c0_6] : memref<4x4x8x32xf32, #tpu.memory_space<vmem>>, vector<4x4x8x32xf32>
    %7 = vector.extract_strided_slice %6 {offsets = [0, 0, 0, 0], sizes = [1, 4, 8, 32], strides = [1, 1, 1, 1]} : vector<4x4x8x32xf32> to vector<1x4x8x32xf32>
    %8 = vector.shape_cast %7 : vector<1x4x8x32xf32> to vector<4x8x32xf32>
    %9 = vector.extract_strided_slice %6 {offsets = [1, 0, 0, 0], sizes = [1, 4, 8, 32], strides = [1, 1, 1, 1]} : vector<4x4x8x32xf32> to vector<1x4x8x32xf32>
    %10 = vector.shape_cast %9 : vector<1x4x8x32xf32> to vector<4x8x32xf32>
    %11 = vector.extract_strided_slice %6 {offsets = [2, 0, 0, 0], sizes = [1, 4, 8, 32], strides = [1, 1, 1, 1]} : vector<4x4x8x32xf32> to vector<1x4x8x32xf32>
    %12 = vector.shape_cast %11 : vector<1x4x8x32xf32> to vector<4x8x32xf32>
    %13 = vector.extract_strided_slice %6 {offsets = [3, 0, 0, 0], sizes = [1, 4, 8, 32], strides = [1, 1, 1, 1]} : vector<4x4x8x32xf32> to vector<1x4x8x32xf32>
    %14 = vector.shape_cast %13 : vector<1x4x8x32xf32> to vector<4x8x32xf32>
    %c0_7 = arith.constant 0 : index
    %c0_8 = arith.constant 0 : index
    %c0_9 = arith.constant 0 : index
    %c0_10 = arith.constant 0 : index
    %15 = vector.load %arg5[%c0_7, %c0_8, %c0_9, %c0_10] : memref<3x4x1x8xf32, #tpu.memory_space<vmem>>, vector<3x4x1x8xf32>
    %16 = vector.extract_strided_slice %15 {offsets = [0, 0, 0, 0], sizes = [1, 4, 1, 8], strides = [1, 1, 1, 1]} : vector<3x4x1x8xf32> to vector<1x4x1x8xf32>
    %17 = vector.shape_cast %16 : vector<1x4x1x8xf32> to vector<4x1x8xf32>
    %18 = vector.extract_strided_slice %15 {offsets = [1, 0, 0, 0], sizes = [1, 4, 1, 8], strides = [1, 1, 1, 1]} : vector<3x4x1x8xf32> to vector<1x4x1x8xf32>
    %19 = vector.shape_cast %18 : vector<1x4x1x8xf32> to vector<4x1x8xf32>
    %20 = vector.extract_strided_slice %15 {offsets = [2, 0, 0, 0], sizes = [1, 4, 1, 8], strides = [1, 1, 1, 1]} : vector<3x4x1x8xf32> to vector<1x4x1x8xf32>
    %21 = vector.shape_cast %20 : vector<1x4x1x8xf32> to vector<4x1x8xf32>
    %c0_11 = arith.constant 0 : index
    %c0_12 = arith.constant 0 : index
    %c0_13 = arith.constant 0 : index
    %22 = vector.load %arg0[%c0_11, %c0_12, %c0_13] : memref<2x8x32xf32, #tpu.memory_space<vmem>>, vector<1x8x32xf32>
    %23 = vector.shape_cast %22 : vector<1x8x32xf32> to vector<8x32xf32>
    %c0_14 = arith.constant 0 : index
    %c0_15 = arith.constant 0 : index
    %c0_16 = arith.constant 0 : index
    %24 = vector.load %arg1[%c0_14, %c0_15, %c0_16] : memref<2x8x16xf32, #tpu.memory_space<vmem>>, vector<1x8x16xf32>
    %25 = vector.shape_cast %24 : vector<1x8x16xf32> to vector<8x16xf32>
    %cst = arith.constant dense<0.000000e+00> : vector<8x32xf32>
    %26 = tpu.matmul %25, %0, %cst {dimension_numbers = #tpu.dot_dimension_numbers<[1], [0], [0], [1], [0, 0, 1, 1], [], []>} : vector<8x16xf32>, vector<16x32xf32>, vector<8x32xf32> -> vector<8x32xf32>
    %27 = vector.broadcast %2 : vector<1x32xf32> to vector<8x32xf32>
    %28 = arith.addf %26, %27 : vector<8x32xf32>
    %cst_17 = arith.constant dense<0.000000e+00> : vector<8xf32>
    %29 = vector.multi_reduction <add>, %23, %cst_17 [1] : vector<8x32xf32> to vector<8xf32>
    %30 = vector.shape_cast %29 : vector<8xf32> to vector<8x1xf32>
    %cst_18 = arith.constant 3.200000e+01 : f32
    %31 = vector.broadcast %cst_18 : f32 to vector<8x1xf32>
    %32 = arith.divf %30, %31 : vector<8x1xf32>
    %33 = vector.broadcast %32 : vector<8x1xf32> to vector<8x32xf32>
    %34 = arith.subf %23, %33 : vector<8x32xf32>
    %35 = arith.mulf %34, %34 : vector<8x32xf32>
    %cst_19 = arith.constant dense<0.000000e+00> : vector<8xf32>
    %36 = vector.multi_reduction <add>, %35, %cst_19 [1] : vector<8x32xf32> to vector<8xf32>
    %37 = vector.shape_cast %36 : vector<8xf32> to vector<8x1xf32>
    %cst_20 = arith.constant 3.200000e+01 : f32
    %38 = vector.broadcast %cst_20 : f32 to vector<8x1xf32>
    %39 = arith.divf %37, %38 : vector<8x1xf32>
    %40 = vector.broadcast %32 : vector<8x1xf32> to vector<8x32xf32>
    %41 = arith.subf %23, %40 : vector<8x32xf32>
    %cst_21 = arith.constant 9.99999974E-6 : f32
    %42 = vector.broadcast %cst_21 : f32 to vector<8x1xf32>
    %43 = arith.addf %39, %42 : vector<8x1xf32>
    %44 = math.rsqrt %43 : vector<8x1xf32>
    %45 = vector.broadcast %44 : vector<8x1xf32> to vector<8x32xf32>
    %46 = arith.mulf %41, %45 : vector<8x32xf32>
    %47 = vector.broadcast %3 : vector<1x32xf32> to vector<8x32xf32>
    %48 = arith.mulf %46, %47 : vector<8x32xf32>
    %49 = vector.broadcast %4 : vector<1x32xf32> to vector<8x32xf32>
    %50 = arith.addf %48, %49 : vector<8x32xf32>
    %51 = vector.shape_cast %50 : vector<8x32xf32> to vector<1x8x32xf32>
    %52 = vector.shape_cast %51 : vector<1x8x32xf32> to vector<1x8x32xf32>
    %53 = vector.broadcast %52 : vector<1x8x32xf32> to vector<4x8x32xf32>
    %54 = vector.shape_cast %28 : vector<8x32xf32> to vector<1x8x32xf32>
    %55 = vector.shape_cast %54 : vector<1x8x32xf32> to vector<1x8x32xf32>
    %56 = vector.broadcast %55 : vector<1x8x32xf32> to vector<4x8x32xf32>
    "tpu.trace_start"() <{level = 10 : i32, message = "hsd,hed->hse"}> : () -> ()
    %cst_22 = arith.constant dense<0.000000e+00> : vector<4x8x8xf32>
    %57 = tpu.matmul %53, %8, %cst_22 {dimension_numbers = #tpu.dot_dimension_numbers<[2], [2], [1], [1], [0, 0, 0, 1, 1, 1], [0], [0]>} : vector<4x8x32xf32>, vector<4x8x32xf32>, vector<4x8x8xf32> -> vector<4x8x8xf32>
    "tpu.trace_stop"() : () -> ()
    %58 = vector.broadcast %17 : vector<4x1x8xf32> to vector<4x8x8xf32>
    %59 = arith.addf %57, %58 : vector<4x8x8xf32>
    "tpu.trace_start"() <{level = 10 : i32, message = "hld,hed->hle"}> : () -> ()
    %cst_23 = arith.constant dense<0.000000e+00> : vector<4x8x8xf32>
    %60 = tpu.matmul %56, %10, %cst_23 {dimension_numbers = #tpu.dot_dimension_numbers<[2], [2], [1], [1], [0, 0, 0, 1, 1, 1], [0], [0]>} : vector<4x8x32xf32>, vector<4x8x32xf32>, vector<4x8x8xf32> -> vector<4x8x8xf32>
    "tpu.trace_stop"() : () -> ()
    %61 = vector.broadcast %19 : vector<4x1x8xf32> to vector<4x8x8xf32>
    %62 = arith.addf %60, %61 : vector<4x8x8xf32>
    "tpu.trace_start"() <{level = 10 : i32, message = "hld,hed->hle"}> : () -> ()
    %cst_24 = arith.constant dense<0.000000e+00> : vector<4x8x8xf32>
    %63 = tpu.matmul %56, %12, %cst_24 {dimension_numbers = #tpu.dot_dimension_numbers<[2], [2], [1], [1], [0, 0, 0, 1, 1, 1], [0], [0]>} : vector<4x8x32xf32>, vector<4x8x32xf32>, vector<4x8x8xf32> -> vector<4x8x8xf32>
    "tpu.trace_stop"() : () -> ()
    %64 = vector.broadcast %21 : vector<4x1x8xf32> to vector<4x8x8xf32>
    %65 = arith.addf %63, %64 : vector<4x8x8xf32>
    %cst_25 = arith.constant 0.353553385 : f32
    %66 = vector.broadcast %cst_25 : f32 to vector<4x8x8xf32>
    %67 = arith.mulf %59, %66 : vector<4x8x8xf32>
    "tpu.trace_start"() <{level = 10 : i32, message = "hse,hle->hsl"}> : () -> ()
    %cst_26 = arith.constant dense<0.000000e+00> : vector<4x8x8xf32>
    %68 = tpu.matmul %67, %62, %cst_26 {dimension_numbers = #tpu.dot_dimension_numbers<[2], [2], [1], [1], [0, 0, 0, 1, 1, 1], [0], [0]>} : vector<4x8x8xf32>, vector<4x8x8xf32>, vector<4x8x8xf32> -> vector<4x8x8xf32>
    "tpu.trace_stop"() : () -> ()
    %cst_27 = arith.constant dense<0xFF800000> : vector<4x8xf32>
    %69 = vector.multi_reduction <maximumf>, %68, %cst_27 [2] : vector<4x8x8xf32> to vector<4x8xf32>
    %70 = vector.shape_cast %69 : vector<4x8xf32> to vector<4x8x1xf32>
    %71 = vector.broadcast %70 : vector<4x8x1xf32> to vector<4x8x8xf32>
    %72 = arith.subf %68, %71 : vector<4x8x8xf32>
    %73 = math.exp %72 : vector<4x8x8xf32>
    %cst_28 = arith.constant dense<0.000000e+00> : vector<4x8xf32>
    %74 = vector.multi_reduction <add>, %73, %cst_28 [2] : vector<4x8x8xf32> to vector<4x8xf32>
    %75 = vector.shape_cast %74 : vector<4x8xf32> to vector<4x8x1xf32>
    %76 = tpu.reciprocal %75 {approx = true} : vector<4x8x1xf32> -> vector<4x8x1xf32>
    %77 = arith.mulf %75, %76 : vector<4x8x1xf32>
    %cst_29 = arith.constant 2.000000e+00 : f32
    %78 = vector.broadcast %cst_29 : f32 to vector<4x8x1xf32>
    %79 = arith.subf %78, %77 : vector<4x8x1xf32>
    %80 = arith.mulf %76, %79 : vector<4x8x1xf32>
    %81 = vector.broadcast %80 : vector<4x8x1xf32> to vector<4x8x8xf32>
    %82 = arith.mulf %73, %81 : vector<4x8x8xf32>
    "tpu.trace_start"() <{level = 10 : i32, message = "hsl,hle->hse"}> : () -> ()
    %cst_30 = arith.constant dense<0.000000e+00> : vector<4x8x8xf32>
    %83 = tpu.matmul %82, %65, %cst_30 {dimension_numbers = #tpu.dot_dimension_numbers<[2], [1], [1], [2], [0, 0, 0, 1, 1, 2], [0], [0]>} : vector<4x8x8xf32>, vector<4x8x8xf32>, vector<4x8x8xf32> -> vector<4x8x8xf32>
    "tpu.trace_stop"() : () -> ()
    "tpu.trace_start"() <{level = 10 : i32, message = "hse,hed->hsd"}> : () -> ()
    %cst_31 = arith.constant dense<0.000000e+00> : vector<4x8x32xf32>
    %84 = tpu.matmul %83, %14, %cst_31 {dimension_numbers = #tpu.dot_dimension_numbers<[2], [1], [1], [2], [0, 0, 0, 1, 1, 2], [0], [0]>} : vector<4x8x8xf32>, vector<4x8x32xf32>, vector<4x8x32xf32> -> vector<4x8x32xf32>
    "tpu.trace_stop"() : () -> ()
    %85 = vector.extract_strided_slice %84 {offsets = [0, 0, 0], sizes = [1, 8, 32], strides = [1, 1, 1]} : vector<4x8x32xf32> to vector<1x8x32xf32>
    %86 = vector.shape_cast %85 : vector<1x8x32xf32> to vector<8x32xf32>
    %87 = vector.extract_strided_slice %84 {offsets = [1, 0, 0], sizes = [1, 8, 32], strides = [1, 1, 1]} : vector<4x8x32xf32> to vector<1x8x32xf32>
    %88 = vector.shape_cast %87 : vector<1x8x32xf32> to vector<8x32xf32>
    %89 = arith.addf %86, %88 : vector<8x32xf32>
    %90 = vector.extract_strided_slice %84 {offsets = [2, 0, 0], sizes = [1, 8, 32], strides = [1, 1, 1]} : vector<4x8x32xf32> to vector<1x8x32xf32>
    %91 = vector.shape_cast %90 : vector<1x8x32xf32> to vector<8x32xf32>
    %92 = arith.addf %89, %91 : vector<8x32xf32>
    %93 = vector.extract_strided_slice %84 {offsets = [3, 0, 0], sizes = [1, 8, 32], strides = [1, 1, 1]} : vector<4x8x32xf32> to vector<1x8x32xf32>
    %94 = vector.shape_cast %93 : vector<1x8x32xf32> to vector<8x32xf32>
    %95 = arith.addf %92, %94 : vector<8x32xf32>
    %96 = arith.addf %23, %95 : vector<8x32xf32>
    %97 = vector.broadcast %5 : vector<1x32xf32> to vector<8x32xf32>
    %98 = arith.addf %96, %97 : vector<8x32xf32>
    %c0_32 = arith.constant 0 : index
    %c0_33 = arith.constant 0 : index
    %c0_34 = arith.constant 0 : index
    %99 = vector.load %arg6[%c0_32, %c0_33, %c0_34] : memref<2x8x32xf32, #tpu.memory_space<vmem>>, vector<1x8x32xf32>
    %100 = vector.shape_cast %99 : vector<1x8x32xf32> to vector<8x32xf32>
    %101 = vector.shape_cast %98 : vector<8x32xf32> to vector<1x8x32xf32>
    tpu.vector_store %arg6[%c0_32, %c0_33, %c0_34], %101 {strides = array<i32>} : memref<2x8x32xf32, #tpu.memory_space<vmem>>, vector<1x8x32xf32>,
    %c1 = arith.constant 1 : index
    %c0_35 = arith.constant 0 : index
    %c0_36 = arith.constant 0 : index
    %102 = vector.load %arg0[%c1, %c0_35, %c0_36] : memref<2x8x32xf32, #tpu.memory_space<vmem>>, vector<1x8x32xf32>
    %103 = vector.shape_cast %102 : vector<1x8x32xf32> to vector<8x32xf32>
    %c1_37 = arith.constant 1 : index
    %c0_38 = arith.constant 0 : index
    %c0_39 = arith.constant 0 : index
    %104 = vector.load %arg1[%c1_37, %c0_38, %c0_39] : memref<2x8x16xf32, #tpu.memory_space<vmem>>, vector<1x8x16xf32>
    %105 = vector.shape_cast %104 : vector<1x8x16xf32> to vector<8x16xf32>
    %cst_40 = arith.constant dense<0.000000e+00> : vector<8x32xf32>
    %106 = tpu.matmul %105, %0, %cst_40 {dimension_numbers = #tpu.dot_dimension_numbers<[1], [0], [0], [1], [0, 0, 1, 1], [], []>} : vector<8x16xf32>, vector<16x32xf32>, vector<8x32xf32> -> vector<8x32xf32>
    %107 = vector.broadcast %2 : vector<1x32xf32> to vector<8x32xf32>
    %108 = arith.addf %106, %107 : vector<8x32xf32>
    %cst_41 = arith.constant dense<0.000000e+00> : vector<8xf32>
    %109 = vector.multi_reduction <add>, %103, %cst_41 [1] : vector<8x32xf32> to vector<8xf32>
    %110 = vector.shape_cast %109 : vector<8xf32> to vector<8x1xf32>
    %cst_42 = arith.constant 3.200000e+01 : f32
    %111 = vector.broadcast %cst_42 : f32 to vector<8x1xf32>
    %112 = arith.divf %110, %111 : vector<8x1xf32>
    %113 = vector.broadcast %112 : vector<8x1xf32> to vector<8x32xf32>
    %114 = arith.subf %103, %113 : vector<8x32xf32>
    %115 = arith.mulf %114, %114 : vector<8x32xf32>
    %cst_43 = arith.constant dense<0.000000e+00> : vector<8xf32>
    %116 = vector.multi_reduction <add>, %115, %cst_43 [1] : vector<8x32xf32> to vector<8xf32>
    %117 = vector.shape_cast %116 : vector<8xf32> to vector<8x1xf32>
    %cst_44 = arith.constant 3.200000e+01 : f32
    %118 = vector.broadcast %cst_44 : f32 to vector<8x1xf32>
    %119 = arith.divf %117, %118 : vector<8x1xf32>
    %120 = vector.broadcast %112 : vector<8x1xf32> to vector<8x32xf32>
    %121 = arith.subf %103, %120 : vector<8x32xf32>
    %cst_45 = arith.constant 9.99999974E-6 : f32
    %122 = vector.broadcast %cst_45 : f32 to vector<8x1xf32>
    %123 = arith.addf %119, %122 : vector<8x1xf32>
    %124 = math.rsqrt %123 : vector<8x1xf32>
    %125 = vector.broadcast %124 : vector<8x1xf32> to vector<8x32xf32>
    %126 = arith.mulf %121, %125 : vector<8x32xf32>
    %127 = vector.broadcast %3 : vector<1x32xf32> to vector<8x32xf32>
    %128 = arith.mulf %126, %127 : vector<8x32xf32>
    %129 = vector.broadcast %4 : vector<1x32xf32> to vector<8x32xf32>
    %130 = arith.addf %128, %129 : vector<8x32xf32>
    %131 = vector.shape_cast %130 : vector<8x32xf32> to vector<1x8x32xf32>
    %132 = vector.shape_cast %131 : vector<1x8x32xf32> to vector<1x8x32xf32>
    %133 = vector.broadcast %132 : vector<1x8x32xf32> to vector<4x8x32xf32>
    %134 = vector.shape_cast %108 : vector<8x32xf32> to vector<1x8x32xf32>
    %135 = vector.shape_cast %134 : vector<1x8x32xf32> to vector<1x8x32xf32>
    %136 = vector.broadcast %135 : vector<1x8x32xf32> to vector<4x8x32xf32>
    "tpu.trace_start"() <{level = 10 : i32, message = "hsd,hed->hse"}> : () -> ()
    %cst_46 = arith.constant dense<0.000000e+00> : vector<4x8x8xf32>
    %137 = tpu.matmul %133, %8, %cst_46 {dimension_numbers = #tpu.dot_dimension_numbers<[2], [2], [1], [1], [0, 0, 0, 1, 1, 1], [0], [0]>} : vector<4x8x32xf32>, vector<4x8x32xf32>, vector<4x8x8xf32> -> vector<4x8x8xf32>
    "tpu.trace_stop"() : () -> ()
    %138 = vector.broadcast %17 : vector<4x1x8xf32> to vector<4x8x8xf32>
    %139 = arith.addf %137, %138 : vector<4x8x8xf32>
    "tpu.trace_start"() <{level = 10 : i32, message = "hld,hed->hle"}> : () -> ()
    %cst_47 = arith.constant dense<0.000000e+00> : vector<4x8x8xf32>
    %140 = tpu.matmul %136, %10, %cst_47 {dimension_numbers = #tpu.dot_dimension_numbers<[2], [2], [1], [1], [0, 0, 0, 1, 1, 1], [0], [0]>} : vector<4x8x32xf32>, vector<4x8x32xf32>, vector<4x8x8xf32> -> vector<4x8x8xf32>
    "tpu.trace_stop"() : () -> ()
    %141 = vector.broadcast %19 : vector<4x1x8xf32> to vector<4x8x8xf32>
    %142 = arith.addf %140, %141 : vector<4x8x8xf32>
    "tpu.trace_start"() <{level = 10 : i32, message = "hld,hed->hle"}> : () -> ()
    %cst_48 = arith.constant dense<0.000000e+00> : vector<4x8x8xf32>
    %143 = tpu.matmul %136, %12, %cst_48 {dimension_numbers = #tpu.dot_dimension_numbers<[2], [2], [1], [1], [0, 0, 0, 1, 1, 1], [0], [0]>} : vector<4x8x32xf32>, vector<4x8x32xf32>, vector<4x8x8xf32> -> vector<4x8x8xf32>
    "tpu.trace_stop"() : () -> ()
    %144 = vector.broadcast %21 : vector<4x1x8xf32> to vector<4x8x8xf32>
    %145 = arith.addf %143, %144 : vector<4x8x8xf32>
    %cst_49 = arith.constant 0.353553385 : f32
    %146 = vector.broadcast %cst_49 : f32 to vector<4x8x8xf32>
    %147 = arith.mulf %139, %146 : vector<4x8x8xf32>
    "tpu.trace_start"() <{level = 10 : i32, message = "hse,hle->hsl"}> : () -> ()
    %cst_50 = arith.constant dense<0.000000e+00> : vector<4x8x8xf32>
    %148 = tpu.matmul %147, %142, %cst_50 {dimension_numbers = #tpu.dot_dimension_numbers<[2], [2], [1], [1], [0, 0, 0, 1, 1, 1], [0], [0]>} : vector<4x8x8xf32>, vector<4x8x8xf32>, vector<4x8x8xf32> -> vector<4x8x8xf32>
    "tpu.trace_stop"() : () -> ()
    %cst_51 = arith.constant dense<0xFF800000> : vector<4x8xf32>
    %149 = vector.multi_reduction <maximumf>, %148, %cst_51 [2] : vector<4x8x8xf32> to vector<4x8xf32>
    %150 = vector.shape_cast %149 : vector<4x8xf32> to vector<4x8x1xf32>
    %151 = vector.broadcast %150 : vector<4x8x1xf32> to vector<4x8x8xf32>
    %152 = arith.subf %148, %151 : vector<4x8x8xf32>
    %153 = math.exp %152 : vector<4x8x8xf32>
    %cst_52 = arith.constant dense<0.000000e+00> : vector<4x8xf32>
    %154 = vector.multi_reduction <add>, %153, %cst_52 [2] : vector<4x8x8xf32> to vector<4x8xf32>
    %155 = vector.shape_cast %154 : vector<4x8xf32> to vector<4x8x1xf32>
    %156 = tpu.reciprocal %155 {approx = true} : vector<4x8x1xf32> -> vector<4x8x1xf32>
    %157 = arith.mulf %155, %156 : vector<4x8x1xf32>
    %cst_53 = arith.constant 2.000000e+00 : f32
    %158 = vector.broadcast %cst_53 : f32 to vector<4x8x1xf32>
    %159 = arith.subf %158, %157 : vector<4x8x1xf32>
    %160 = arith.mulf %156, %159 : vector<4x8x1xf32>
    %161 = vector.broadcast %160 : vector<4x8x1xf32> to vector<4x8x8xf32>
    %162 = arith.mulf %153, %161 : vector<4x8x8xf32>
    "tpu.trace_start"() <{level = 10 : i32, message = "hsl,hle->hse"}> : () -> ()
    %cst_54 = arith.constant dense<0.000000e+00> : vector<4x8x8xf32>
    %163 = tpu.matmul %162, %145, %cst_54 {dimension_numbers = #tpu.dot_dimension_numbers<[2], [1], [1], [2], [0, 0, 0, 1, 1, 2], [0], [0]>} : vector<4x8x8xf32>, vector<4x8x8xf32>, vector<4x8x8xf32> -> vector<4x8x8xf32>
    "tpu.trace_stop"() : () -> ()
    "tpu.trace_start"() <{level = 10 : i32, message = "hse,hed->hsd"}> : () -> ()
    %cst_55 = arith.constant dense<0.000000e+00> : vector<4x8x32xf32>
    %164 = tpu.matmul %163, %14, %cst_55 {dimension_numbers = #tpu.dot_dimension_numbers<[2], [1], [1], [2], [0, 0, 0, 1, 1, 2], [0], [0]>} : vector<4x8x8xf32>, vector<4x8x32xf32>, vector<4x8x32xf32> -> vector<4x8x32xf32>
    "tpu.trace_stop"() : () -> ()
    %165 = vector.extract_strided_slice %164 {offsets = [0, 0, 0], sizes = [1, 8, 32], strides = [1, 1, 1]} : vector<4x8x32xf32> to vector<1x8x32xf32>
    %166 = vector.shape_cast %165 : vector<1x8x32xf32> to vector<8x32xf32>
    %167 = vector.extract_strided_slice %164 {offsets = [1, 0, 0], sizes = [1, 8, 32], strides = [1, 1, 1]} : vector<4x8x32xf32> to vector<1x8x32xf32>
    %168 = vector.shape_cast %167 : vector<1x8x32xf32> to vector<8x32xf32>
    %169 = arith.addf %166, %168 : vector<8x32xf32>
    %170 = vector.extract_strided_slice %164 {offsets = [2, 0, 0], sizes = [1, 8, 32], strides = [1, 1, 1]} : vector<4x8x32xf32> to vector<1x8x32xf32>
    %171 = vector.shape_cast %170 : vector<1x8x32xf32> to vector<8x32xf32>
    %172 = arith.addf %169, %171 : vector<8x32xf32>
    %173 = vector.extract_strided_slice %164 {offsets = [3, 0, 0], sizes = [1, 8, 32], strides = [1, 1, 1]} : vector<4x8x32xf32> to vector<1x8x32xf32>
    %174 = vector.shape_cast %173 : vector<1x8x32xf32> to vector<8x32xf32>
    %175 = arith.addf %172, %174 : vector<8x32xf32>
    %176 = arith.addf %103, %175 : vector<8x32xf32>
    %177 = vector.broadcast %5 : vector<1x32xf32> to vector<8x32xf32>
    %178 = arith.addf %176, %177 : vector<8x32xf32>
    %c1_56 = arith.constant 1 : index
    %c0_57 = arith.constant 0 : index
    %c0_58 = arith.constant 0 : index
    %179 = vector.load %arg6[%c1_56, %c0_57, %c0_58] : memref<2x8x32xf32, #tpu.memory_space<vmem>>, vector<1x8x32xf32>
    %180 = vector.shape_cast %179 : vector<1x8x32xf32> to vector<8x32xf32>
    %181 = vector.shape_cast %178 : vector<8x32xf32> to vector<1x8x32xf32>
    tpu.vector_store %arg6[%c1_56, %c0_57, %c0_58], %181 {strides = array<i32>} : memref<2x8x32xf32, #tpu.memory_space<vmem>>, vector<1x8x32xf32>,
    return
  }
}

</mosaic_0001>

<bundles_post_ra>
// kernel: cross_attention_block.1
= control target key start
LH: loop header
LB: loop body
LE: loop exit
PB: predicated region body
PF: predicated region fallthrough
CT: control target
= control target key end

     0   :  { %vm135_vm0 = vcmask 261120   ;;  %v4506_v4 = vmov 0.0|0.0   ;;  %s5081_s0 = inlined_call_operand.vmem [shape: f32[2,8,32], index: 0, kind: input, shape index: {}]   ;;  %s5082_s1 = inlined_call_operand.vmem [shape: f32[2,8,16], index: 1, kind: input, shape index: {}]   ;;  %s5083_s2 = inlined_call_operand.vmem [shape: f32[16,32], index: 2, kind: input, shape index: {}]   ;;  %s5084_s3 = inlined_call_operand.vmem [shape: f32[8,32], index: 3, kind: input, shape index: {}]   ;;  %s5085_s4 = inlined_call_operand.vmem [shape: f32[4,4,8,32], index: 4, kind: input, shape index: {}]   ;;  %s5086_s5 = inlined_call_operand.vmem [shape: f32[3,4,1,8], index: 5, kind: input, shape index: {}]   ;;  %s5087_s6 = inlined_call_operand.hbm [shape: f32[2,8,32], index: 6, kind: output, shape index: {}]  }
   0x1   :  { %v4550_v0 = vld [vmem:[%s5081_s0] sm:$0xff]  ;;  %v25_v2 = vld [vmem:[%s5083_s2 + $0x8] sm:$0xff]  ;;  %4434 = vmatprep.subr.bf16.mxu0 %v4506_v4 }
   0x2   :  { %v24_v1 = vld [vmem:[%s5083_s2] sm:$0xff]  ;;  %v136_v3 = vsel %vm135_vm0, %v4550_v0, 0.0 }
   0x3   :  { %v4561_v5 = vpack.c.bf16 %v25_v2, %v24_v1 }
   0x4   :  { %11 = vsyncpa [#allocation3], 0  ;;  %137 = vadd.xlane.f32.xlu0 %v136_v3  ;;  %vm4507_vm1 = vmmov 0   ;;  %v4508_v6 = vmov 0.0   ;;  %v56_v7 = vld [vmem:[%s5082_s1] sm:$0xff]  ;;  %vm61_vm2 = vcmask 130048   ;;  %v57_v19 = vlaneseq }
   0x5   :  { %4184 = vmatprep.mubr.msk.f32.mxu0 %vm4507_vm1, %v4508_v6  ;;  %4436 = vmatpush3.bf16.msra.mxu0 %v4561_v5  ;;  %v4581_v13 = vld [vmem:[%s5085_s4] sm:$0xff]  ;;  %v4586_v14 = vld [vmem:[%s5085_s4 + $0x8] sm:$0xff]  ;;  %v4615_v32 = vld [vmem:[%s5085_s4 + $0x10] sm:$0xff]  ;;  %vm1118_vm3 = vcmask 64512  }
   0x6   :  { %4187 = vmatprep.subr.mxu1 %v4508_v6  ;;  %4192 = vmatprep.subr.mxu0 %v4508_v6  ;;  %v4594_v21 = vshrl.u32 %v57_v19, 7  ;;  %v4600_v23 = vld [vmem:[%s5084_s3] sm:$0xff]  ;;  %v4620_v33 = vld [vmem:[%s5085_s4 + $0x18] sm:$0xff]  ;;  %v4643_v36 = vld [vmem:[%s5085_s4 + $0x28] sm:$0xff] }
   0x7   :  { %4189 = vmatprep.mubr.msk.f32.mxu1 %vm4507_vm1, %v4508_v6  ;;  %4188 = vmatpush3.xpose.msk.msra.mxu1 %vm135_vm0, %v4581_v13  ;;  %v4638_v35 = vld [vmem:[%s5085_s4 + $0x20] sm:$0xff]  ;;  %v4661_v38 = vld [vmem:[%s5085_s4 + $0x30] sm:$0xff]  ;;  %v4666_v39 = vld [vmem:[%s5085_s4 + $0x38] sm:$0xff] }
   0x8   :  { %4185 = vmatmul.mubr.msk.f32.vlgmr.msra.gmra.mrb[0].mxu0 %vm61_vm2, %v56_v7  ;;  %4197 = vmatprep.subr.mxu1 %v4508_v6  ;;  %v152_v22 = vsub.s32 1, %v4594_v21  ;;  %v157_v24 = vsub.s32 2, %v4594_v21  ;;  %v59_v30 = vsub.s32 0, %v4594_v21  ;;  %v4683_v40 = vld [vmem:[%s5085_s4 + $0x40] sm:$0xff]  ;;  %v4688_v41 = vld [vmem:[%s5085_s4 + $0x48] sm:$0xff]  ;;  %v4705_v42 = vld [vmem:[%s5085_s4 + $0x50] sm:$0xff] }
   0x9   :  { %4194 = vmatprep.mubr.msk.f32.mxu0 %vm4507_vm1, %v4508_v6  ;;  %v4710_v43 = vld [vmem:[%s5085_s4 + $0x58] sm:$0xff]  ;;  %v4735_v50 = vld [vmem:[%s5086_s5] ss:$0 sm:$0xff]  ;;  %v4740_v51 = vld [vmem:[%s5086_s5 + $0x1] ss:$0 sm:$0xff] }
   0xa   :  { %v4604_v25 = vrot.slane %v4600_v23, %v152_v22  ;;  %v4607_v28 = vrot.slane %v4600_v23, %v157_v24  ;;  %v4625_v34 = vrot.slane %v4600_v23, %v59_v30  ;;  %v4745_v54 = vld [vmem:[%s5086_s5 + $0x4] ss:$0 sm:$0xff]  ;;  %v4750_v55 = vld [vmem:[%s5086_s5 + $0x5] ss:$0 sm:$0xff]  ;;  %v4757_v60 = vld [vmem:[%s5086_s5 + $0x2] ss:$0 sm:$0xff] }
   0xb   :  { %v4762_v61 = vld [vmem:[%s5086_s5 + $0x3] ss:$0 sm:$0xff]  ;;  %v4769_v3 = vld [vmem:[%s5086_s5 + $0x6] ss:$0 sm:$0xff]  ;;  %v4774_v7 = vld [vmem:[%s5086_s5 + $0x7] ss:$0 sm:$0xff] }
   0xc   :  { %v4794_v22 = vld [vmem:[%s5086_s5 + $0x9] ss:$0 sm:$0xff] }
   0xe   :  { %4193 = vmatpush3.xpose.msk.msra.mxu0 %vm135_vm0, %v4586_v14 }
   0xf   :  { %4202 = vmatprep.subr.mxu0 %v4508_v6 }
  0x91   :  { %v138_v8 = vpop.xlane.xlu0 %137 }
  0x92   :  { %v140_v9 = vmul.f32 0.03125, %v138_v8 }
  0x94   :  { %v141_v10 = vsub.f32 %v4550_v0, %v140_v9 }
  0x96   :  { %v142_v11 = vmul.f32 %v141_v10, %v141_v10 }
  0x98   :  { %v143_v12 = vsel %vm135_vm0, %v142_v11, 0.0 }
  0x99   :  { %144 = vadd.xlane.f32.xlu0 %v143_v12 }
  0xdb   :  { %v131_v15 = vpop.f32.mrb[0].mxu0 }
  0xdc   :  { %v4186_v16 = vpop.f32.mrb[1].mxu0  ;;  %v132_v37 = vadd.f32 %v131_v15, %v4625_v34 }
 0x126   :  { %v145_v17 = vpop.xlane.xlu0 %144 }
 0x127   :  { %v146_v18 = vmul.f32 0.03125, %v145_v17 }
 0x129   :  { %v147_v20 = vadd.f32 1e-05, %v146_v18 }
 0x12b   :  { %4446 = vrsqrt.f32 %v147_v20  ;;  %v4789_v20 = vld [vmem:[%s5086_s5 + $0x8] ss:$0 sm:$0xff] }
 0x135   :  { %v4447_v26 = vpop.eup %4446 }
 0x136   :  { %v149_v27 = vmul.f32 %v4447_v26, %v141_v10 }
 0x138   :  { %v154_v29 = vmul.f32 %v4604_v25, %v149_v27 }
 0x13a   :  { %v159_v31 = vadd.f32 %v4607_v28, %v154_v29 }
 0x13c   :  { %4190 = vmatmul.mubr.msk.f32.vlgmr.msra.gmra.mrb[0].mxu1 %vm135_vm0, %v159_v31  ;;  %4195 = vmatmul.mubr.msk.f32.vlgmr.msra.gmra.mrb[2].mxu0 %vm135_vm0, %v159_v31 }
 0x13d   :  { %4198 = vmatpush3.xpose.msk.msra.mxu1 %vm135_vm0, %v4615_v32  ;;  %4203 = vmatpush3.xpose.msk.msra.mxu0 %vm135_vm0, %v4620_v33 }
 0x13e   :  { %4199 = vmatprep.mubr.msk.f32.mxu1 %vm4507_vm1, %v4508_v6  ;;  %4204 = vmatprep.mubr.msk.f32.mxu0 %vm4507_vm1, %v4508_v6 }
 0x13f   :  { %4207 = vmatprep.subr.mxu1 %v4508_v6  ;;  %4212 = vmatprep.subr.mxu0 %v4508_v6 }
 0x140   :  { %4200 = vmatmul.mubr.msk.f32.vlgmr.msra.gmra.mrb[2].mxu1 %vm135_vm0, %v159_v31  ;;  %4205 = vmatmul.mubr.msk.f32.vlgmr.msra.gmra.mrb[4].mxu0 %vm135_vm0, %v159_v31 }
 0x141   :  { %4208 = vmatpush3.xpose.msk.msra.mxu1 %vm135_vm0, %v4638_v35  ;;  %4213 = vmatpush3.xpose.msk.msra.mxu0 %vm135_vm0, %v4643_v36 }
 0x142   :  { %4209 = vmatprep.mubr.msk.f32.mxu1 %vm4507_vm1, %v4508_v6  ;;  %4214 = vmatprep.mubr.msk.f32.mxu0 %vm4507_vm1, %v4508_v6 }
 0x143   :  { %4217 = vmatprep.subr.mxu1 %v4508_v6  ;;  %4222 = vmatprep.subr.mxu0 %v4508_v6 }
 0x144   :  { %4210 = vmatmul.mubr.msk.f32.vlgmr.msra.gmra.mrb[4].mxu1 %vm135_vm0, %v132_v37  ;;  %4215 = vmatmul.mubr.msk.f32.vlgmr.msra.gmra.mrb[6].mxu0 %vm135_vm0, %v132_v37 }
 0x145   :  { %4218 = vmatpush3.xpose.msk.msra.mxu1 %vm135_vm0, %v4661_v38  ;;  %4223 = vmatpush3.xpose.msk.msra.mxu0 %vm135_vm0, %v4666_v39 }
 0x146   :  { %4219 = vmatprep.mubr.msk.f32.mxu1 %vm4507_vm1, %v4508_v6  ;;  %4224 = vmatprep.mubr.msk.f32.mxu0 %vm4507_vm1, %v4508_v6 }
 0x147   :  { %4227 = vmatprep.subr.mxu1 %v4508_v6  ;;  %4232 = vmatprep.subr.mxu0 %v4508_v6 }
 0x148   :  { %4220 = vmatmul.mubr.msk.f32.vlgmr.msra.gmra.mrb[6].mxu1 %vm135_vm0, %v132_v37  ;;  %4225 = vmatmul.mubr.msk.f32.vlgmr.msra.gmra.mrb[8].mxu0 %vm135_vm0, %v132_v37 }
 0x149   :  { %4228 = vmatpush3.xpose.msk.msra.mxu1 %vm135_vm0, %v4683_v40  ;;  %4233 = vmatpush3.xpose.msk.msra.mxu0 %vm135_vm0, %v4688_v41 }
 0x14a   :  { %4229 = vmatprep.mubr.msk.f32.mxu1 %vm4507_vm1, %v4508_v6  ;;  %4234 = vmatprep.mubr.msk.f32.mxu0 %vm4507_vm1, %v4508_v6 }
 0x14b   :  { %4237 = vmatprep.subr.mxu1 %v4508_v6  ;;  %4242 = vmatprep.subr.mxu0 %v4508_v6 }
 0x14c   :  { %4230 = vmatmul.mubr.msk.f32.vlgmr.msra.gmra.mrb[8].mxu1 %vm135_vm0, %v132_v37  ;;  %4235 = vmatmul.mubr.msk.f32.vlgmr.msra.gmra.mrb[10].mxu0 %vm135_vm0, %v132_v37 }
 0x14d   :  { %4238 = vmatpush3.xpose.msk.msra.mxu1 %vm135_vm0, %v4705_v42  ;;  %4243 = vmatpush3.xpose.msk.msra.mxu0 %vm135_vm0, %v4710_v43 }
 0x14e   :  { %4239 = vmatprep.mubr.msk.f32.mxu1 %vm4507_vm1, %v4508_v6  ;;  %4244 = vmatprep.mubr.msk.f32.mxu0 %vm4507_vm1, %v4508_v6 }
 0x14f   :  { %4247 = vmatprep.subr.mxu1 %v4508_v6  ;;  %4252 = vmatprep.subr.mxu0 %v4508_v6 }
 0x150   :  { %4240 = vmatmul.mubr.msk.f32.vlgmr.msra.gmra.mrb[10].mxu1 %vm135_vm0, %v132_v37  ;;  %4245 = vmatmul.mubr.msk.f32.vlgmr.msra.gmra.mrb[12].mxu0 %vm135_vm0, %v132_v37 }
 0x151   :  { %4249 = vmatprep.mubr.msk.f32.mxu1 %vm4507_vm1, %v4508_v6  ;;  %4254 = vmatprep.mubr.msk.f32.mxu0 %vm4507_vm1, %v4508_v6 }
 0x20f   :  { %v256_v44 = vpop.f32.mrb[0].mxu1  ;;  %v329_v45 = vpop.f32.mrb[2].mxu0 }
 0x210   :  { %v4191_v46 = vpop.f32.mrb[1].mxu1  ;;  %v4196_v47 = vpop.f32.mrb[3].mxu0  ;;  %v257_v56 = vadd.f32 %v4735_v50, %v256_v44  ;;  %v330_v57 = vadd.f32 %v4740_v51, %v329_v45 }
 0x212   :  { %v1114_v8 = vmul.f32 0.35355338, %v257_v56  ;;  %v1115_v9 = vmul.f32 0.35355338, %v330_v57 }
 0x213   :  { %v402_v48 = vpop.f32.mrb[2].mxu1  ;;  %v475_v49 = vpop.f32.mrb[4].mxu0 }
 0x214   :  { %v4201_v52 = vpop.f32.mrb[3].mxu1  ;;  %v4206_v53 = vpop.f32.mrb[5].mxu0  ;;  %v403_v10 = vadd.f32 %v4757_v60, %v402_v48  ;;  %v476_v11 = vadd.f32 %v4762_v61, %v475_v49 }
 0x216   :  { %v1116_v24 = vmul.f32 0.35355338, %v403_v10  ;;  %v1117_v26 = vmul.f32 0.35355338, %v476_v11 }
 0x217   :  { %v575_v58 = vpop.f32.mrb[4].mxu1  ;;  %v648_v59 = vpop.f32.mrb[6].mxu0 }
 0x218   :  { %v576_v62 = vadd.f32 %v4745_v54, %v575_v58  ;;  %v649_v63 = vadd.f32 %v4750_v55, %v648_v59  ;;  %v4211_v1 = vpop.f32.mrb[5].mxu1  ;;  %v4216_v2 = vpop.f32.mrb[7].mxu0 }
 0x21a   :  { %4248 = vmatpush3.xpose.msk.msra.mxu1 %vm1118_vm3, %v576_v62  ;;  %4253 = vmatpush3.xpose.msk.msra.mxu0 %vm1118_vm3, %v649_v63 }
 0x21b   :  { %v721_v12 = vpop.f32.mrb[6].mxu1  ;;  %v794_v15 = vpop.f32.mrb[8].mxu0  ;;  %4257 = vmatprep.subr.mxu1 %v4508_v6  ;;  %4262 = vmatprep.subr.mxu0 %v4508_v6 }
 0x21c   :  { %v722_v16 = vadd.f32 %v4769_v3, %v721_v12  ;;  %v795_v17 = vadd.f32 %v4774_v7, %v794_v15  ;;  %v4221_v18 = vpop.f32.mrb[7].mxu1  ;;  %v4226_v19 = vpop.f32.mrb[9].mxu0 }
 0x21d   :  { %4250 = vmatmul.mubr.msk.f32.vlgmr.msra.gmra.mrb[12].mxu1 %vm1118_vm3, %v1114_v8  ;;  %4255 = vmatmul.mubr.msk.f32.vlgmr.msra.gmra.mrb[14].mxu0 %vm1118_vm3, %v1115_v9 }
 0x21e   :  { %4258 = vmatpush3.xpose.msk.msra.mxu1 %vm1118_vm3, %v722_v16  ;;  %4263 = vmatpush3.xpose.msk.msra.mxu0 %vm1118_vm3, %v795_v17 }
 0x21f   :  { %v891_v27 = vpop.f32.mrb[8].mxu1  ;;  %v964_v29 = vpop.f32.mrb[10].mxu0  ;;  %4259 = vmatprep.mubr.msk.f32.mxu1 %vm4507_vm1, %v4508_v6  ;;  %4264 = vmatprep.mubr.msk.f32.mxu0 %vm4507_vm1, %v4508_v6 }
 0x220   :  { %v892_v30 = vadd.f32 %v4789_v20, %v891_v27  ;;  %v965_v31 = vadd.f32 %v4794_v22, %v964_v29  ;;  %v4231_v37 = vpop.f32.mrb[9].mxu1  ;;  %v4236_v44 = vpop.f32.mrb[11].mxu0  ;;  %4267 = vmatprep.subr.mxu1 %v4508_v6  ;;  %4272 = vmatprep.subr.mxu0 %v4508_v6 }
 0x221   :  { %4260 = vmatmul.mubr.msk.f32.vlgmr.msra.gmra.mrb[14].mxu1 %vm1118_vm3, %v1116_v24  ;;  %4265 = vmatmul.mubr.msk.f32.vlgmr.msra.gmra.mrb[16].mxu0 %vm1118_vm3, %v1117_v26 }
 0x222   :  { %4268 = vmatpush3.msra.mxu1 %v892_v30  ;;  %4273 = vmatpush3.msra.mxu0 %v965_v31 }
 0x223   :  { %v1037_v45 = vpop.f32.mrb[10].mxu1  ;;  %v4808_v46 = vpop.f32.mrb[12].mxu0  ;;  %4269 = vmatprep.mubr.msk.f32.mxu1 %vm4507_vm1, %v4508_v6  ;;  %4277 = vmatprep.subr.mxu1 %v4508_v6 }
 0x224   :  { %v4241_v47 = vpop.f32.mrb[11].mxu1  ;;  %v4246_v48 = vpop.f32.mrb[13].mxu0  ;;  %4274 = vmatprep.mubr.msk.f32.mxu0 %vm4507_vm1, %v4508_v6  ;;  %4282 = vmatprep.subr.mxu0 %v4508_v6 }
 0x2f0   :  { %v1191_v49 = vpop.f32.mrb[12].mxu1  ;;  %v1267_v52 = vpop.f32.mrb[14].mxu0 }
 0x2f1   :  { %v4251_v53 = vpop.f32.mrb[13].mxu1  ;;  %v4256_v56 = vpop.f32.mrb[15].mxu0  ;;  %v1423_v57 = vsel %vm1118_vm3, %v1191_v49, -inf  ;;  %v1426_v19 = vsel %vm1118_vm3, %v1267_v52, -inf }
 0x2f2   :  { %1424 = vmax.xlane.f32.xlu1 %v1423_v57  ;;  %v4825_v57 = vld [vmem:[%s5086_s5 + $0xa] ss:$0 sm:$0xff] }
 0x2f4   :  { %v1343_v58 = vpop.f32.mrb[14].mxu1  ;;  %v1419_v59 = vpop.f32.mrb[16].mxu0 }
 0x2f5   :  { %v4261_v62 = vpop.f32.mrb[15].mxu1  ;;  %v4266_v63 = vpop.f32.mrb[17].mxu0  ;;  %v1429_v1 = vsel %vm1118_vm3, %v1343_v58, -inf  ;;  %v1432_v24 = vsel %vm1118_vm3, %v1419_v59, -inf }
 0x2f6   :  { %1430 = vmax.xlane.f32.xlu1 %v1429_v1 }
 0x37f   :  { %v1425_v2 = vpop.xlane.xlu1 %1424 }
 0x380   :  { %v1435_v8 = vsub.f32 %v1191_v49, %v1425_v2  ;;  %v1038_v2 = vadd.f32 %v4825_v57, %v1037_v45 }
 0x382   :  { %v1439_v9 = vmul.f32 1.442695, %v1435_v8 }
 0x383   :  { %v1431_v10 = vpop.xlane.xlu1 %1430 }
 0x384   :  { %4448 = vpow2.f32 %v1439_v9  ;;  %v1437_v11 = vsub.f32 %v1343_v58, %v1431_v10 }
 0x386   :  { %v1443_v12 = vmul.f32 1.442695, %v1437_v11 }
 0x388   :  { %4450 = vpow2.f32 %v1443_v12 }
 0x38e   :  { %v4449_v15 = vpop.eup %4448 }
 0x38f   :  { %v1447_v16 = vsel %vm1118_vm3, %v4449_v15, 0.0 }
 0x390   :  { %1448 = vadd.xlane.f32.xlu0 %v1447_v16 }
 0x392   :  { %v4451_v17 = vpop.eup %4450 }
 0x393   :  { %v1453_v18 = vsel %vm1118_vm3, %v4451_v17, 0.0 }
 0x394   :  { %1454 = vadd.xlane.f32.xlu1 %v1453_v18  ;;  %1427 = vmax.xlane.f32.xlu0 %v1426_v19 }
 0x398   :  { %1433 = vmax.xlane.f32.xlu1 %v1432_v24 }
 0x41d   :  { %v1449_v26 = vpop.xlane.xlu0 %1448 }
 0x41e   :  { %4452 = vrcp.f32 %v1449_v26 }
 0x421   :  { %v1455_v27 = vpop.xlane.xlu1 %1454  ;;  %v1428_v29 = vpop.xlane.xlu0 %1427 }
 0x422   :  { %4454 = vrcp.f32 %v1455_v27  ;;  %v1436_v30 = vsub.f32 %v1267_v52, %v1428_v29 }
 0x424   :  { %v1441_v31 = vmul.f32 1.442695, %v1436_v30 }
 0x425   :  { %v1434_v37 = vpop.xlane.xlu1 %1433 }
 0x426   :  { %4456 = vpow2.f32 %v1441_v31  ;;  %v1438_v44 = vsub.f32 %v1419_v59, %v1434_v37  ;;  %v4831_v59 = vld [vmem:[%s5081_s0 + $0x8] sm:$0xff] }
 0x427   :  { %v2150_v11 = vsel %vm135_vm0, %v4831_v59, 0.0 }
 0x428   :  { %v4453_v47 = vpop.eup %4452  ;;  %v1445_v48 = vmul.f32 1.442695, %v1438_v44  ;;  %v4856_v44 = vld [vmem:[%s5086_s5 + $0xb] ss:$0 sm:$0xff] }
 0x429   :  { %v1463_v49 = vmul.f32 %v4453_v47, %v1449_v26 }
 0x42a   :  { %4458 = vpow2.f32 %v1445_v48 }
 0x42b   :  { %v1467_v53 = vsub.f32 2.0, %v1463_v49 }
 0x42c   :  { %v4455_v56 = vpop.eup %4454 }
 0x42d   :  { %v1471_v58 = vmul.f32 %v4453_v47, %v1467_v53  ;;  %v1465_v62 = vmul.f32 %v4455_v56, %v1455_v27 }
 0x42f   :  { %v1475_v63 = vmul.f32 %v4449_v15, %v1471_v58  ;;  %v1469_v1 = vsub.f32 2.0, %v1465_v62  ;;  %v4847_v15 = vld [vmem:[%s5085_s4 + $0x60] sm:$0xff] }
 0x430   :  { %v4457_v52 = vpop.eup %4456 }
 0x431   :  { %v1473_v8 = vmul.f32 %v4455_v56, %v1469_v1  ;;  %4270 = vmatmul.mubr.msk.f32.vlgmr.msra.gmra.mrb[16].mxu1 %vm1118_vm3, %v1475_v63  ;;  %v1450_v9 = vsel %vm1118_vm3, %v4457_v52, 0.0  ;;  %v1111_v56 = vadd.f32 %v4856_v44, %v4808_v46  ;;  %v4870_v63 = vld [vmem:[%s5085_s4 + $0x68] sm:$0xff]  ;;  %v4877_v46 = vld [vmem:[%s5085_s4 + $0x70] sm:$0xff] }
 0x432   :  { %4278 = vmatpush3.msra.mxu1 %v1038_v2  ;;  %1451 = vadd.xlane.f32.xlu0 %v1450_v9  ;;  %v4036_v9 = vld [vmem:[%s5082_s1 + $0x8] sm:$0xff] }
 0x433   :  { %v1477_v10 = vmul.f32 %v4451_v17, %v1473_v8  ;;  %4279 = vmatprep.mubr.msk.f32.mxu1 %vm4507_vm1, %v4508_v6  ;;  %4287 = vmatprep.subr.mxu1 %v4508_v6 }
 0x434   :  { %v4459_v45 = vpop.eup %4458 }
 0x435   :  { %4280 = vmatmul.mubr.msk.f32.vlgmr.msra.gmra.mrb[18].mxu1 %vm1118_vm3, %v1477_v10  ;;  %v1456_v12 = vsel %vm1118_vm3, %v4459_v45, 0.0 }
 0x436   :  { %2151 = vadd.xlane.f32.xlu0 %v2150_v11  ;;  %1457 = vadd.xlane.f32.xlu1 %v1456_v12 }
 0x437   :  { %4289 = vmatprep.mubr.msk.f32.mxu1 %vm4507_vm1, %v4508_v6  ;;  %4288 = vmatpush3.msra.mxu1 %v4847_v15 }
 0x438   :  { %4297 = vmatprep.subr.mxu1 %v4508_v6 }
 0x4bf   :  { %v1452_v16 = vpop.xlane.xlu0 %1451 }
 0x4c0   :  { %4460 = vrcp.f32 %v1452_v16 }
 0x4c3   :  { %v2152_v17 = vpop.xlane.xlu0 %2151  ;;  %v1458_v18 = vpop.xlane.xlu1 %1457 }
 0x4c4   :  { %v2153_v19 = vmul.f32 0.03125, %v2152_v17  ;;  %4462 = vrcp.f32 %v1458_v18 }
 0x4c6   :  { %v2154_v24 = vsub.f32 %v4831_v59, %v2153_v19 }
 0x4c8   :  { %v2155_v26 = vmul.f32 %v2154_v24, %v2154_v24 }
 0x4ca   :  { %v4461_v27 = vpop.eup %4460  ;;  %v2156_v29 = vsel %vm135_vm0, %v2155_v26, 0.0 }
 0x4cb   :  { %v1464_v30 = vmul.f32 %v4461_v27, %v1452_v16  ;;  %2157 = vadd.xlane.f32.xlu1 %v2156_v29 }
 0x4cd   :  { %v1468_v31 = vsub.f32 2.0, %v1464_v30 }
 0x4ce   :  { %v4463_v37 = vpop.eup %4462 }
 0x4cf   :  { %v1472_v47 = vmul.f32 %v4461_v27, %v1468_v31  ;;  %v1466_v48 = vmul.f32 %v4463_v37, %v1458_v18 }
 0x4d1   :  { %v1476_v49 = vmul.f32 %v4457_v52, %v1472_v47  ;;  %v1470_v53 = vsub.f32 2.0, %v1466_v48 }
 0x4d3   :  { %v1474_v58 = vmul.f32 %v4463_v37, %v1470_v53  ;;  %4275 = vmatmul.mubr.msk.f32.vlgmr.msra.gmra.mrb[18].mxu0 %vm1118_vm3, %v1476_v49 }
 0x4d4   :  { %4283 = vmatpush3.msra.mxu0 %v1111_v56  ;;  %4284 = vmatprep.mubr.msk.f32.mxu0 %vm4507_vm1, %v4508_v6 }
 0x4d5   :  { %v1478_v62 = vmul.f32 %v4459_v45, %v1474_v58  ;;  %4292 = vmatprep.subr.mxu0 %v4508_v6 }
 0x4d7   :  { %4285 = vmatmul.mubr.msk.f32.vlgmr.msra.gmra.mrb[20].mxu0 %vm1118_vm3, %v1478_v62 }
 0x4d8   :  { %4294 = vmatprep.mubr.msk.f32.mxu0 %vm4507_vm1, %v4508_v6  ;;  %4293 = vmatpush3.msra.mxu0 %v4870_v63 }
 0x4d9   :  { %4302 = vmatprep.subr.mxu0 %v4508_v6 }
 0x504   :  { %v1548_v1 = vpop.f32.mrb[16].mxu1 }
 0x505   :  { %v4271_v52 = vpop.f32.mrb[17].mxu1  ;;  %4290 = vmatmul.mubr.msk.f32.vlgmr.msra.gmra.mrb[20].mxu1 %vm1118_vm3, %v1548_v1 }
 0x506   :  { %4298 = vmatpush3.msra.mxu1 %v4877_v46  ;;  %4299 = vmatprep.mubr.msk.f32.mxu1 %vm4507_vm1, %v4508_v6 }
 0x507   :  { %4437 = vmatprep.subr.bf16.mxu1 %v4506_v4 }
 0x508   :  { %v1694_v2 = vpop.f32.mrb[18].mxu1 }
 0x509   :  { %v4281_v8 = vpop.f32.mrb[19].mxu1  ;;  %4300 = vmatmul.mubr.msk.f32.vlgmr.msra.gmra.mrb[22].mxu1 %vm1118_vm3, %v1694_v2 }
 0x50a   :  { %4439 = vmatpush3.bf16.msra.mxu1 %v4561_v5  ;;  %4311 = vmatprep.mubr.msk.f32.mxu1 %vm4507_vm1, %v4508_v6 }
 0x50b   :  { %4319 = vmatprep.subr.mxu1 %v4508_v6 }
 0x50d   :  { %4312 = vmatmul.mubr.msk.f32.vlgmr.msra.gmra.mrb[24].mxu1 %vm61_vm2, %v4036_v9 }
 0x50e   :  { %4321 = vmatprep.mubr.msk.f32.mxu1 %vm4507_vm1, %v4508_v6 }
 0x513   :  { %4320 = vmatpush3.xpose.msk.msra.mxu1 %vm135_vm0, %v4586_v14  ;;  %v4915_v14 = vld [vmem:[%s5085_s4 + $0x78] sm:$0xff]  ;;  %s4509_s4 = smov [#allocation2]  }
 0x514   :  { %4329 = vmatprep.subr.mxu1 %v4508_v6  ;;  %s3971_s11 = sshll.u32 %s4509_s4, 4  ;;  %s3972_s11 = int_to_ptr.vmem [resolvable:$true] %s3971_s11 }
 0x515   :  { %s4482_s3 = scalar_lea.vmem %s3972_s11, 256  ;;  %p4487_p1 = scmp.lt.s32.totalorder %s3972_s11, %s3972_s11 }
 0x516   :  { %p4483_p0 = scmp.ne.s32.totalorder %s3972_s11, %s4482_s3  ;;  %p4488_p2 = scmp.lt.s32.totalorder %s4482_s3, %s4482_s3 }
 0x518   :  { %p4489_p3 = por %p4488_p2, %p4487_p1 }
 0x51a   :  { %p4490_p4 = pnand %p4489_p3, %p4483_p0 }
 0x558   :  { %v2158_v4 = vpop.xlane.xlu1 %2157 }
 0x559   :  { %v2159_v5 = vmul.f32 0.03125, %v2158_v4 }
 0x55b   :  { %v2160_v10 = vadd.f32 1e-05, %v2159_v5 }
 0x55d   :  { %4464 = vrsqrt.f32 %v2160_v10 }
 0x567   :  { %v4465_v11 = vpop.eup %4464 }
 0x568   :  { %v2162_v45 = vmul.f32 %v4465_v11, %v2154_v24 }
 0x56a   :  { %v2163_v12 = vmul.f32 %v2162_v45, %v4604_v25 }
 0x56c   :  { %v2164_v16 = vadd.f32 %v2163_v12, %v4607_v28 }
 0x56e   :  { %4322 = vmatmul.mubr.msk.f32.vlgmr.msra.gmra.mrb[26].mxu1 %vm135_vm0, %v2164_v16 }
 0x56f   :  { %4330 = vmatpush3.xpose.msk.msra.mxu1 %vm135_vm0, %v4620_v33  ;;  %4331 = vmatprep.mubr.msk.f32.mxu1 %vm4507_vm1, %v4508_v6 }
 0x570   :  { %4339 = vmatprep.subr.mxu1 %v4508_v6 }
 0x572   :  { %4332 = vmatmul.mubr.msk.f32.vlgmr.msra.gmra.mrb[28].mxu1 %vm135_vm0, %v2164_v16 }
 0x573   :  { %4340 = vmatpush3.xpose.msk.msra.mxu1 %vm135_vm0, %v4643_v36  ;;  %4341 = vmatprep.mubr.msk.f32.mxu1 %vm4507_vm1, %v4508_v6 }
 0x574   :  { %4349 = vmatprep.subr.mxu1 %v4508_v6 }
 0x5a6   :  { %v1621_v25 = vpop.f32.mrb[18].mxu0 }
 0x5a7   :  { %v4276_v28 = vpop.f32.mrb[19].mxu0  ;;  %4295 = vmatmul.mubr.msk.f32.vlgmr.msra.gmra.mrb[22].mxu0 %vm1118_vm3, %v1621_v25 }
 0x5a8   :  { %4303 = vmatpush3.msra.mxu0 %v4915_v14  ;;  %4304 = vmatprep.mubr.msk.f32.mxu0 %vm4507_vm1, %v4508_v6 }
 0x5a9   :  { %4314 = vmatprep.subr.mxu0 %v4508_v6 }
 0x5aa   :  { %v1767_v33 = vpop.f32.mrb[20].mxu0 }
 0x5ab   :  { %v4286_v36 = vpop.f32.mrb[21].mxu0  ;;  %4305 = vmatmul.mubr.msk.f32.vlgmr.msra.gmra.mrb[24].mxu0 %vm1118_vm3, %v1767_v33 }
 0x5ac   :  { %4316 = vmatprep.mubr.msk.f32.mxu0 %vm4507_vm1, %v4508_v6 }
 0x5af   :  { %4315 = vmatpush3.xpose.msk.msra.mxu0 %vm135_vm0, %v4581_v13 }
 0x5b0   :  { %4324 = vmatprep.subr.mxu0 %v4508_v6 }
 0x5b2   :  { %4317 = vmatmul.mubr.msk.f32.vlgmr.msra.gmra.mrb[26].mxu0 %vm135_vm0, %v2164_v16 }
 0x5b3   :  { %4325 = vmatpush3.xpose.msk.msra.mxu0 %vm135_vm0, %v4615_v32  ;;  %4326 = vmatprep.mubr.msk.f32.mxu0 %vm4507_vm1, %v4508_v6 }
 0x5b4   :  { %4334 = vmatprep.subr.mxu0 %v4508_v6 }
 0x5b6   :  { %4327 = vmatmul.mubr.msk.f32.vlgmr.msra.gmra.mrb[28].mxu0 %vm135_vm0, %v2164_v16 }
 0x5b7   :  { %4335 = vmatpush3.xpose.msk.msra.mxu0 %vm135_vm0, %v4638_v35  ;;  %4336 = vmatprep.mubr.msk.f32.mxu0 %vm4507_vm1, %v4508_v6 }
 0x5b8   :  { %4344 = vmatprep.subr.mxu0 %v4508_v6 }
 0x5d8   :  { %v1840_v13 = vpop.f32.mrb[20].mxu1 }
 0x5d9   :  { %v4291_v17 = vpop.f32.mrb[21].mxu1 }
 0x5dc   :  { %v1986_v18 = vpop.f32.mrb[22].mxu1 }
 0x5dd   :  { %v4301_v19 = vpop.f32.mrb[23].mxu1 }
 0x5e0   :  { %v2146_v32 = vpop.f32.mrb[24].mxu1 }
 0x5e1   :  { %v2147_v24 = vadd.f32 %v2146_v32, %v4625_v34  ;;  %v4313_v26 = vpop.f32.mrb[25].mxu1 }
 0x5e3   :  { %4337 = vmatmul.mubr.msk.f32.vlgmr.msra.gmra.mrb[30].mxu0 %vm135_vm0, %v2147_v24  ;;  %4342 = vmatmul.mubr.msk.f32.vlgmr.msra.gmra.mrb[30].mxu1 %vm135_vm0, %v2147_v24 }
 0x5e4   :  { %4345 = vmatpush3.xpose.msk.msra.mxu0 %vm135_vm0, %v4661_v38  ;;  %4350 = vmatpush3.xpose.msk.msra.mxu1 %vm135_vm0, %v4666_v39 }
 0x5e5   :  { %4346 = vmatprep.mubr.msk.f32.mxu0 %vm4507_vm1, %v4508_v6  ;;  %4351 = vmatprep.mubr.msk.f32.mxu1 %vm4507_vm1, %v4508_v6 }
 0x5e6   :  { %4354 = vmatprep.subr.mxu0 %v4508_v6  ;;  %4359 = vmatprep.subr.mxu1 %v4508_v6 }
 0x5e7   :  { %4347 = vmatmul.mubr.msk.f32.vlgmr.msra.gmra.mrb[32].mxu0 %vm135_vm0, %v2147_v24  ;;  %4352 = vmatmul.mubr.msk.f32.vlgmr.msra.gmra.mrb[32].mxu1 %vm135_vm0, %v2147_v24 }
 0x5e8   :  { %4355 = vmatpush3.xpose.msk.msra.mxu0 %vm135_vm0, %v4683_v40  ;;  %4360 = vmatpush3.xpose.msk.msra.mxu1 %vm135_vm0, %v4688_v41 }
 0x5e9   :  { %4356 = vmatprep.mubr.msk.f32.mxu0 %vm4507_vm1, %v4508_v6  ;;  %4361 = vmatprep.mubr.msk.f32.mxu1 %vm4507_vm1, %v4508_v6 }
 0x5ea   :  { %4364 = vmatprep.subr.mxu0 %v4508_v6  ;;  %4369 = vmatprep.subr.mxu1 %v4508_v6 }
 0x5eb   :  { %4357 = vmatmul.mubr.msk.f32.vlgmr.msra.gmra.mrb[34].mxu0 %vm135_vm0, %v2147_v24  ;;  %4362 = vmatmul.mubr.msk.f32.vlgmr.msra.gmra.mrb[34].mxu1 %vm135_vm0, %v2147_v24 }
 0x5ec   :  { %4365 = vmatpush3.xpose.msk.msra.mxu0 %vm135_vm0, %v4705_v42  ;;  %4370 = vmatpush3.xpose.msk.msra.mxu1 %vm135_vm0, %v4710_v43  ;;  %v2069_v43 = vsub.s32 3, %v4594_v21 }
 0x5ed   :  { %4366 = vmatprep.mubr.msk.f32.mxu0 %vm4507_vm1, %v4508_v6  ;;  %4371 = vmatprep.mubr.msk.f32.mxu1 %vm4507_vm1, %v4508_v6 }
 0x5ee   :  { %4374 = vmatprep.subr.mxu0 %v4508_v6  ;;  %4379 = vmatprep.subr.mxu1 %v4508_v6  ;;  %v4985_v31 = vrot.slane %v4600_v23, %v2069_v43 }
 0x5ef   :  { %4367 = vmatmul.mubr.msk.f32.vlgmr.msra.gmra.mrb[36].mxu0 %vm135_vm0, %v2147_v24  ;;  %4372 = vmatmul.mubr.msk.f32.vlgmr.msra.gmra.mrb[36].mxu1 %vm135_vm0, %v2147_v24 }
 0x5f0   :  { %4376 = vmatprep.mubr.msk.f32.mxu0 %vm4507_vm1, %v4508_v6  ;;  %4381 = vmatprep.mubr.msk.f32.mxu1 %vm4507_vm1, %v4508_v6 }
 0x641   :  { %v2304_v34 = vpop.f32.mrb[26].mxu1 }
 0x642   :  { %v4323_v35 = vpop.f32.mrb[27].mxu1  ;;  %v2305_v62 = vadd.f32 %v4740_v51, %v2304_v34 }
 0x644   :  { %v3012_v9 = vmul.f32 0.35355338, %v2305_v62 }
 0x645   :  { %v2444_v38 = vpop.f32.mrb[28].mxu1 }
 0x646   :  { %v4333_v39 = vpop.f32.mrb[29].mxu1  ;;  %v2445_v4 = vadd.f32 %v4762_v61, %v2444_v38 }
 0x67a   :  { %v1913_v40 = vpop.f32.mrb[22].mxu0 }
 0x67b   :  { %v2063_v41 = vadd.f32 %v1913_v40, %v1840_v13  ;;  %v4296_v42 = vpop.f32.mrb[23].mxu0 }
 0x67d   :  { %v2064_v27 = vadd.f32 %v2063_v41, %v1986_v18 }
 0x67e   :  { %v2059_v29 = vpop.f32.mrb[24].mxu0 }
 0x67f   :  { %v2065_v30 = vadd.f32 %v2064_v27, %v2059_v29  ;;  %v4306_v37 = vpop.f32.mrb[25].mxu0 }
 0x681   :  { %v2066_v47 = vadd.f32 %v2065_v30, %v4550_v0 }
 0x683   :  { %v2071_v48 = vadd.f32 %v4985_v31, %v2066_v47 }
 0x685   :  { %2072 = vst.msk [vmem:[#allocation2] sm:$0xff] %vm135_vm0, %v2071_v48  ;;  %v2234_v49 = vpop.f32.mrb[26].mxu0 }
 0x686   :  { %v4318_v53 = vpop.f32.mrb[27].mxu0  ;;  %v2235_v21 = vadd.f32 %v4735_v50, %v2234_v49 }
 0x688   :  { %v3011_v5 = vmul.f32 0.35355338, %v2235_v21 }
 0x689   :  { %v2374_v56 = vpop.f32.mrb[28].mxu0 }
 0x68a   :  { %v4328_v58 = vpop.f32.mrb[29].mxu0  ;;  %v2375_v51 = vadd.f32 %v4757_v60, %v2374_v56  ;;  %v3014_v60 = vmul.f32 0.35355338, %v2445_v4 }
 0x68c   :  { %v3013_v61 = vmul.f32 0.35355338, %v2375_v51 }
 0x6b6   :  { %v2517_v1 = vpop.f32.mrb[30].mxu0  ;;  %v2587_v52 = vpop.f32.mrb[30].mxu1 }
 0x6b7   :  { %v2518_v23 = vadd.f32 %v4745_v54, %v2517_v1  ;;  %v2588_v2 = vadd.f32 %v4750_v55, %v2587_v52  ;;  %v4338_v8 = vpop.f32.mrb[31].mxu0  ;;  %v4343_v0 = vpop.f32.mrb[31].mxu1 }
 0x6b9   :  { %4375 = vmatpush3.xpose.msk.msra.mxu0 %vm1118_vm3, %v2518_v23  ;;  %4380 = vmatpush3.xpose.msk.msra.mxu1 %vm1118_vm3, %v2588_v2 }
 0x6ba   :  { %v2657_v10 = vpop.f32.mrb[32].mxu0  ;;  %v2727_v50 = vpop.f32.mrb[32].mxu1  ;;  %4384 = vmatprep.subr.mxu0 %v4508_v6  ;;  %4389 = vmatprep.subr.mxu1 %v4508_v6 }
 0x6bb   :  { %v2658_v54 = vadd.f32 %v4769_v3, %v2657_v10  ;;  %v2728_v55 = vadd.f32 %v4774_v7, %v2727_v50  ;;  %v4348_v11 = vpop.f32.mrb[33].mxu0  ;;  %v4353_v45 = vpop.f32.mrb[33].mxu1 }
 0x6bc   :  { %4377 = vmatmul.mubr.msk.f32.vlgmr.msra.gmra.mrb[38].mxu0 %vm1118_vm3, %v3011_v5  ;;  %4382 = vmatmul.mubr.msk.f32.vlgmr.msra.gmra.mrb[38].mxu1 %vm1118_vm3, %v3012_v9 }
 0x6bd   :  { %4385 = vmatpush3.xpose.msk.msra.mxu0 %vm1118_vm3, %v2658_v54  ;;  %4390 = vmatpush3.xpose.msk.msra.mxu1 %vm1118_vm3, %v2728_v55 }
 0x6be   :  { %v2797_v12 = vpop.f32.mrb[34].mxu0  ;;  %v2867_v16 = vpop.f32.mrb[34].mxu1  ;;  %4386 = vmatprep.mubr.msk.f32.mxu0 %vm4507_vm1, %v4508_v6  ;;  %4391 = vmatprep.mubr.msk.f32.mxu1 %vm4507_vm1, %v4508_v6 }
 0x6bf   :  { %v2798_v3 = vadd.f32 %v4789_v20, %v2797_v12  ;;  %v2868_v7 = vadd.f32 %v4794_v22, %v2867_v16  ;;  %v4358_v25 = vpop.f32.mrb[35].mxu0  ;;  %v4363_v28 = vpop.f32.mrb[35].mxu1  ;;  %4394 = vmatprep.subr.mxu0 %v4508_v6  ;;  %4399 = vmatprep.subr.mxu1 %v4508_v6 }
 0x6c0   :  { %4387 = vmatmul.mubr.msk.f32.vlgmr.msra.gmra.mrb[40].mxu0 %vm1118_vm3, %v3013_v61  ;;  %4392 = vmatmul.mubr.msk.f32.vlgmr.msra.gmra.mrb[40].mxu1 %vm1118_vm3, %v3014_v60 }
 0x6c1   :  { %4395 = vmatpush3.msra.mxu0 %v2798_v3  ;;  %4400 = vmatpush3.msra.mxu1 %v2868_v7 }
 0x6c2   :  { %v5016_v33 = vpop.f32.mrb[36].mxu0  ;;  %v5018_v36 = vpop.f32.mrb[36].mxu1  ;;  %4396 = vmatprep.mubr.msk.f32.mxu0 %vm4507_vm1, %v4508_v6  ;;  %4401 = vmatprep.mubr.msk.f32.mxu1 %vm4507_vm1, %v4508_v6 }
 0x6c3   :  { %v4368_v20 = vpop.f32.mrb[37].mxu0  ;;  %v4373_v22 = vpop.f32.mrb[37].mxu1  ;;  %4404 = vmatprep.subr.mxu0 %v4508_v6  ;;  %4409 = vmatprep.subr.mxu1 %v4508_v6  ;;  %v3008_v28 = vadd.f32 %v4856_v44, %v5018_v36 }
 0x78f   :  { %v3087_v13 = vpop.f32.mrb[38].mxu0  ;;  %v3163_v17 = vpop.f32.mrb[38].mxu1 }
 0x790   :  { %v4378_v18 = vpop.f32.mrb[39].mxu0  ;;  %v4383_v19 = vpop.f32.mrb[39].mxu1  ;;  %v3322_v32 = vsel %vm1118_vm3, %v3163_v17, -inf  ;;  %v3319_v24 = vsel %vm1118_vm3, %v3087_v13, -inf }
 0x791   :  { %3323 = vmax.xlane.f32.xlu1 %v3322_v32  ;;  %3320 = vmax.xlane.f32.xlu0 %v3319_v24 }
 0x793   :  { %v3239_v26 = vpop.f32.mrb[40].mxu0  ;;  %v3315_v34 = vpop.f32.mrb[40].mxu1 }
 0x794   :  { %v4388_v35 = vpop.f32.mrb[41].mxu0  ;;  %v4393_v38 = vpop.f32.mrb[41].mxu1  ;;  %v3328_v39 = vsel %vm1118_vm3, %v3315_v34, -inf  ;;  %v3325_v40 = vsel %vm1118_vm3, %v3239_v26, -inf }
 0x795   :  { %3329 = vmax.xlane.f32.xlu1 %v3328_v39  ;;  %3326 = vmax.xlane.f32.xlu0 %v3325_v40 }
 0x81e   :  { %v3324_v41 = vpop.xlane.xlu1 %3323  ;;  %v3321_v42 = vpop.xlane.xlu0 %3320 }
 0x81f   :  { %v3332_v43 = vsub.f32 %v3163_v17, %v3324_v41  ;;  %v3331_v27 = vsub.f32 %v3087_v13, %v3321_v42  ;;  %v2938_v13 = vadd.f32 %v4825_v57, %v5016_v33 }
 0x821   :  { %v3337_v29 = vmul.f32 1.442695, %v3332_v43  ;;  %v3335_v30 = vmul.f32 1.442695, %v3331_v27 }
 0x822   :  { %v3330_v37 = vpop.xlane.xlu1 %3329  ;;  %v3327_v47 = vpop.xlane.xlu0 %3326 }
 0x823   :  { %4466 = vpow2.f32 %v3337_v29  ;;  %v3334_v48 = vsub.f32 %v3315_v34, %v3330_v37  ;;  %v3333_v49 = vsub.f32 %v3239_v26, %v3327_v47 }
 0x824   :  { %4468 = vpow2.f32 %v3335_v30 }
 0x825   :  { %v3341_v53 = vmul.f32 1.442695, %v3334_v48  ;;  %v3339_v56 = vmul.f32 1.442695, %v3333_v49 }
 0x827   :  { %4470 = vpow2.f32 %v3341_v53 }
 0x828   :  { %4472 = vpow2.f32 %v3339_v56 }
 0x82d   :  { %v4467_v58 = vpop.eup %4466 }
 0x82e   :  { %v4469_v62 = vpop.eup %4468  ;;  %v3346_v21 = vsel %vm1118_vm3, %v4467_v58, 0.0 }
 0x82f   :  { %3347 = vadd.xlane.f32.xlu1 %v3346_v21  ;;  %v3343_v1 = vsel %vm1118_vm3, %v4469_v62, 0.0 }
 0x830   :  { %3344 = vadd.xlane.f32.xlu0 %v3343_v1 }
 0x831   :  { %v4471_v52 = vpop.eup %4470 }
 0x832   :  { %v4473_v23 = vpop.eup %4472  ;;  %v3352_v2 = vsel %vm1118_vm3, %v4471_v52, 0.0 }
 0x833   :  { %3353 = vadd.xlane.f32.xlu1 %v3352_v2  ;;  %v3349_v8 = vsel %vm1118_vm3, %v4473_v23, 0.0 }
 0x834   :  { %3350 = vadd.xlane.f32.xlu0 %v3349_v8 }
 0x8bc   :  { %v3348_v0 = vpop.xlane.xlu1 %3347 }
 0x8bd   :  { %4474 = vrcp.f32 %v3348_v0  ;;  %v3345_v9 = vpop.xlane.xlu0 %3344 }
 0x8be   :  { %4476 = vrcp.f32 %v3345_v9 }
 0x8c0   :  { %v3354_v4 = vpop.xlane.xlu1 %3353 }
 0x8c1   :  { %4478 = vrcp.f32 %v3354_v4  ;;  %v3351_v5 = vpop.xlane.xlu0 %3350 }
 0x8c2   :  { %4480 = vrcp.f32 %v3351_v5 }
 0x8c7   :  { %v4475_v51 = vpop.eup %4474 }
 0x8c8   :  { %v4477_v10 = vpop.eup %4476  ;;  %v3360_v50 = vmul.f32 %v4475_v51, %v3348_v0 }
 0x8c9   :  { %v3359_v54 = vmul.f32 %v4477_v10, %v3345_v9 }
 0x8ca   :  { %v3364_v55 = vsub.f32 2.0, %v3360_v50 }
 0x8cb   :  { %v4479_v11 = vpop.eup %4478  ;;  %v3363_v45 = vsub.f32 2.0, %v3359_v54 }
 0x8cc   :  { %v4481_v60 = vpop.eup %4480  ;;  %v3368_v61 = vmul.f32 %v4475_v51, %v3364_v55  ;;  %v3362_v12 = vmul.f32 %v4479_v11, %v3354_v4 }
 0x8cd   :  { %v3367_v16 = vmul.f32 %v4477_v10, %v3363_v45  ;;  %v3361_v3 = vmul.f32 %v4481_v60, %v3351_v5 }
 0x8ce   :  { %v3372_v7 = vmul.f32 %v4467_v58, %v3368_v61  ;;  %v3366_v25 = vsub.f32 2.0, %v3362_v12 }
 0x8cf   :  { %v3371_v20 = vmul.f32 %v4469_v62, %v3367_v16  ;;  %v3365_v22 = vsub.f32 2.0, %v3361_v3 }
 0x8d0   :  { %v3370_v17 = vmul.f32 %v4479_v11, %v3366_v25  ;;  %4402 = vmatmul.mubr.msk.f32.vlgmr.msra.gmra.mrb[42].mxu1 %vm1118_vm3, %v3372_v7 }
 0x8d1   :  { %v3369_v18 = vmul.f32 %v4481_v60, %v3365_v22  ;;  %4397 = vmatmul.mubr.msk.f32.vlgmr.msra.gmra.mrb[42].mxu0 %vm1118_vm3, %v3371_v20  ;;  %4410 = vmatpush3.msra.mxu1 %v3008_v28 }
 0x8d2   :  { %v3374_v19 = vmul.f32 %v4471_v52, %v3370_v17  ;;  %4405 = vmatpush3.msra.mxu0 %v2938_v13  ;;  %4406 = vmatprep.mubr.msk.f32.mxu0 %vm4507_vm1, %v4508_v6 }
 0x8d3   :  { %v3373_v32 = vmul.f32 %v4473_v23, %v3369_v18  ;;  %4411 = vmatprep.mubr.msk.f32.mxu1 %vm4507_vm1, %v4508_v6  ;;  %4414 = vmatprep.subr.mxu0 %v4508_v6 }
 0x8d4   :  { %4412 = vmatmul.mubr.msk.f32.vlgmr.msra.gmra.mrb[44].mxu1 %vm1118_vm3, %v3374_v19  ;;  %4419 = vmatprep.subr.mxu1 %v4508_v6 }
 0x8d5   :  { %4407 = vmatmul.mubr.msk.f32.vlgmr.msra.gmra.mrb[44].mxu0 %vm1118_vm3, %v3373_v32  ;;  %4420 = vmatpush3.msra.mxu1 %v4870_v63 }
 0x8d6   :  { %4415 = vmatpush3.msra.mxu0 %v4847_v15  ;;  %4416 = vmatprep.mubr.msk.f32.mxu0 %vm4507_vm1, %v4508_v6 }
 0x8d7   :  { %4421 = vmatprep.mubr.msk.f32.mxu1 %vm4507_vm1, %v4508_v6  ;;  %4424 = vmatprep.subr.mxu0 %v4508_v6 }
 0x8d8   :  { %4429 = vmatprep.subr.mxu1 %v4508_v6 }
 0x9a3   :  { %v3517_v57 = vpop.f32.mrb[42].mxu1 }
 0x9a4   :  { %v3444_v44 = vpop.f32.mrb[42].mxu0  ;;  %v4403_v33 = vpop.f32.mrb[43].mxu1  ;;  %4422 = vmatmul.mubr.msk.f32.vlgmr.msra.gmra.mrb[46].mxu1 %vm1118_vm3, %v3517_v57 }
 0x9a5   :  { %v4398_v36 = vpop.f32.mrb[43].mxu0  ;;  %4417 = vmatmul.mubr.msk.f32.vlgmr.msra.gmra.mrb[46].mxu0 %vm1118_vm3, %v3444_v44  ;;  %4430 = vmatpush3.msra.mxu1 %v4915_v14 }
 0x9a6   :  { %4425 = vmatpush3.msra.mxu0 %v4877_v46  ;;  %4426 = vmatprep.mubr.msk.f32.mxu0 %vm4507_vm1, %v4508_v6 }
 0x9a7   :  { %v3663_v15 = vpop.f32.mrb[44].mxu1  ;;  %4431 = vmatprep.mubr.msk.f32.mxu1 %vm4507_vm1, %v4508_v6 }
 0x9a8   :  { %v3590_v63 = vpop.f32.mrb[44].mxu0  ;;  %v4413_v24 = vpop.f32.mrb[45].mxu1  ;;  %4432 = vmatmul.mubr.msk.f32.vlgmr.msra.gmra.mrb[48].mxu1 %vm1118_vm3, %v3663_v15 }
 0x9a9   :  { %v4408_v26 = vpop.f32.mrb[45].mxu0  ;;  %4427 = vmatmul.mubr.msk.f32.vlgmr.msra.gmra.mrb[48].mxu0 %vm1118_vm3, %v3590_v63 }
 0xa77   :  { %v3809_v34 = vpop.f32.mrb[46].mxu1 }
 0xa78   :  { %v3736_v35 = vpop.f32.mrb[46].mxu0  ;;  %v4423_v38 = vpop.f32.mrb[47].mxu1 }
 0xa79   :  { %v3959_v14 = vadd.f32 %v3809_v34, %v3736_v35  ;;  %v4418_v39 = vpop.f32.mrb[47].mxu0 }
 0xa7b   :  { %v3955_v46 = vpop.f32.mrb[48].mxu1 }
 0xa7c   :  { %v3882_v40 = vpop.f32.mrb[48].mxu0  ;;  %v4433_v41 = vpop.f32.mrb[49].mxu1 }
 0xa7d   :  { %v3960_v42 = vadd.f32 %v3959_v14, %v3882_v40  ;;  %v4428_v43 = vpop.f32.mrb[49].mxu0 }
 0xa7f   :  { %v3961_v27 = vadd.f32 %v3960_v42, %v3955_v46 }
 0xa81   :  { %v3962_v6 = vadd.f32 %v4831_v59, %v3961_v27 }
 0xa83   :  { %v3963_v29 = vadd.f32 %v3962_v6, %v4985_v31 }
 0xa85   :  { %3965 = vst.msk [vmem:[#allocation2 + $0x8] sm:$0xff] %vm135_vm0, %v3963_v29 }
 0xa86   :  { %4493 = shalt.err (!%p4490_p4)
}
 0xa87   :  { %s4494_s14 = scalar_lea.hbm %s5087_s6, 256 }
 0xa88   :  { %p4495_p5 = scmp.ne.s32.totalorder %s5087_s6, %s4494_s14  ;;  %p4498_p6 = scmp.lt.u32.totalorder %s4494_s14, %s5087_s6 }
 0xa8a   :  { %p4500_p7 = pnand %p4498_p6, %p4495_p5 }
 0xa8c   :  { %4503 = shalt.err (!%p4500_p7)
}
 0xa8d   :  { %s4510_s19 = smov 128   ;;  %s4511_s20 = smov 8  }
 0xa8e   :  { %3977 = dma.vmem_to_hbm [thread:$0]  %s3972_s11, 256, %s5087_s6, [#allocation3], %s4510_s19, %s4510_s19, %s4511_s20  }
 0xa8f   :  { %4504 = dma.done.wait [#allocation3], 256  }
 0xa90   :  { %4505 = vsyncadd [#allocation3], 4294967040 }
 0xa91   :  { %3981 = vsyncpa [#allocation3], 1 }

</bundles_post_ra>
